<compile_context>
chip_gen: v7x
topology: tpu7x:2x2x1
jax: 0.10.0
libtpu: 0.0.40
codegen_flags: <defaults>
</compile_context>

<pallas_src>
import functools

import jax
import jax.numpy as jnp
import numpy as np
from jax import lax
from jax.experimental import pallas as pl
from jax.experimental.pallas import tpu as pltpu


# ----------------------------- Pallas kernel ---------------------------------
def cnn_kernel(x_ref, w1_ref, b1_ref, w2_ref, b2_ref, out_ref):
    # x_ref : (TB, K) bf16  -- batch-major tile of flattened inputs (batch on sublanes)
    # w1_ref: (H, K)  bf16  -- composed conv1/pool1/conv2/pool2/dense1 weight (VMEM)
    # b1_ref: (H, 1)  f32   -- composed bias (VMEM)
    # w2_ref: (H,)    f32   -- dense2 weight (SMEM scalars)
    # b2_ref: (1,)    f32   -- dense2 bias   (SMEM scalar)
    # out_ref: (1, TB) f32  -- sigmoid output, lane-dense

    # dense1 (composed): MXU matmul contracting K; result (H, TB), batch on lanes.
    d1 = lax.dot_general(
        w1_ref[...], x_ref[...],
        dimension_numbers=(((1,), (1,)), ((), ())),
        preferred_element_type=jnp.float32)
    d1 = jnp.tanh(d1 + b1_ref[...])                      # f32 element-wise (v5e-safe)

    # TODO(synk): F.dropout (p=0.5, train-mode) omitted -- identity / inference semantics.

    # dense2: (1,H)x(H,TB) with H=4 -> unrolled VPU FMAs with SMEM scalars (no MXU).
    H = d1.shape[0]
    d2 = w2_ref[0] * d1[0:1, :]
    for h in range(1, H):
        d2 = d2 + w2_ref[h] * d1[h:h + 1, :]
    d2 = jnp.tanh(d2 + b2_ref[0])

    # sigmoid (exact reciprocal; EUP exp)
    out_ref[...] = pl.reciprocal(1.0 + jnp.exp(-d2), approx=False)


# ----------------------------- wrapper ----------------------------------------
def _round_up(x, m):
    return ((x + m - 1) // m) * m


def _pick_tb(B, max_tb=1024):
    """Wide lane tiles (HBM-bound kernel); >=2 grid steps when batch allows (v7x megacore)."""
    bp = _round_up(max(B, 1), 128)
    if bp <= 128:
        return 128
    return min(max_tb, _round_up(pl.cdiv(bp, 2), 128))


def _xla_forward(x_bk, w1_t, b1_col, w2_vec, b2_vec):
    """Plain fused XLA path for tiny batches (kernel-invocation overhead dominates there)."""
    xf = x_bk.astype(jnp.float32)
    d1 = jnp.tanh(xf @ w1_t.astype(jnp.float32).T + b1_col[:, 0][None, :])
    d2 = jnp.tanh(d1 @ w2_vec[:, None] + b2_vec[0])
    return 1.0 / (1.0 + jnp.exp(-d2[:, 0]))


def cnn_forward(x_bk, w1_t, b1_col, w2_vec, b2_vec, *,
                max_tb=1024, min_pallas_batch=256, force_pallas=False):
    """x_bk: (B, K) flattened uv (ideally already bf16 from the producer). Returns (B,) probs."""
    B, K = x_bk.shape
    H = w1_t.shape[0]
    if x_bk.dtype != jnp.bfloat16:
        x_bk = x_bk.astype(jnp.bfloat16)   # producer should emit bf16 to avoid this pass

    if B < min_pallas_batch and not force_pallas:
        return _xla_forward(x_bk, w1_t, b1_col, w2_vec, b2_vec)

    tb = _pick_tb(B, max_tb)
    num_tiles = pl.cdiv(B, tb)
    Bp = num_tiles * tb                    # output padded to full lane tiles (stores unmasked)

    out = pl.pallas_call(
        cnn_kernel,
        out_shape=jax.ShapeDtypeStruct((1, Bp), jnp.float32),
        grid_spec=pltpu.PrefetchScalarGridSpec(
            num_scalar_prefetch=0,
            grid=(num_tiles,),
            in_specs=[
                # x: last tile may overrun B; Pallas clips the DMA, garbage columns discarded.
                pl.BlockSpec((tb, K), lambda b: (b, 0)),
                pl.BlockSpec((H, K), lambda b: (0, 0)),      # resident composed weight
                pl.BlockSpec((H, 1), lambda b: (0, 0)),      # resident composed bias
                pl.BlockSpec(memory_space=pltpu.MemorySpace.SMEM),   # dense2 weight scalars
                pl.BlockSpec(memory_space=pltpu.MemorySpace.SMEM),   # dense2 bias scalar
            ],
            out_specs=pl.BlockSpec((1, tb), lambda b: (0, b)),       # lane-dense output
        ),
        compiler_params=pltpu.CompilerParams(
            dimension_semantics=("parallel",),
        ),
    )(x_bk, w1_t, b1_col, w2_vec, b2_vec)
    return out[0, :B]                                        # torch.squeeze


# ------------------- host-side affine chain + composition ----------------------
def _affine_chain(uv, conv1_w, conv1_b, conv2_w, conv2_b, d1_w, d1_b):
    """conv1 -> avgpool(2) -> conv2 -> avgpool(2) -> squeeze -> dense1 (linear part).
    uv: (C, L) single sample. Returns (H,) pre-tanh dense1 activations."""
    C, L = uv.shape
    O1, KS = conv1_w.shape[0], conv1_w.shape[2]
    L1 = L - (KS - 1)
    y = jnp.zeros((O1, L1), jnp.float32)
    for k in range(KS):
        y = y + conv1_w[:, :, k] @ uv[:, k:k + L1]
    y = y + conv1_b[:, None]
    P1 = L1 // 2
    y = y[:, :2 * P1].reshape(O1, P1, 2).mean(axis=2)        # AvgPool1d(2)

    O2 = conv2_w.shape[0]
    L2 = P1 - (KS - 1)
    z = jnp.zeros((O2, L2), jnp.float32)
    for k in range(KS):
        z = z + conv2_w[:, :, k] @ y[:, k:k + L2]
    z = z + conv2_b[:, None]
    P2 = L2 // 2
    z = z[:, :2 * P2].reshape(O2, P2, 2).mean(axis=2)        # AvgPool1d(2)
    z = z.reshape(-1)                                        # torch.squeeze -> (dim//4 - 2,)
    return d1_w @ z + d1_b                                   # (H,)


def compose_params(conv1_w, conv1_b, conv2_w, conv2_b, d1_w, d1_b, d2_w, d2_b, C, L):
    """Fold the whole linear chain into one (H, C*L) matrix + bias (exact, chain is affine)."""
    K = C * L
    aff = functools.partial(_affine_chain, conv1_w=conv1_w, conv1_b=conv1_b,
                            conv2_w=conv2_w, conv2_b=conv2_b, d1_w=d1_w, d1_b=d1_b)
    b1c = aff(jnp.zeros((C, L), jnp.float32))                # (H,)
    basis = jnp.eye(K, dtype=jnp.float32).reshape(K, C, L)
    rows = jax.vmap(aff)(basis) - b1c[None, :]               # (K, H): uv_flat @ rows + b1c
    w1_t = rows.T.astype(jnp.bfloat16)                       # (H, K) bf16 MXU operand
    b1_col = b1c[:, None].astype(jnp.float32)                # (H, 1)
    w2_vec = d2_w.reshape(-1).astype(jnp.float32)            # (H,)  SMEM scalars
    b2_vec = d2_b.reshape(1).astype(jnp.float32)             # (1,)  SMEM scalar
    return w1_t, b1_col, w2_vec, b2_vec


def ref_forward(uv_batch, conv1_w, conv1_b, conv2_w, conv2_b, d1_w, d1_b, d2_w, d2_b):
    """Pure-JAX f32 reference of the (inference-mode) PyTorch forward."""
    def single(uv):
        h = jnp.tanh(_affine_chain(uv, conv1_w, conv1_b, conv2_w, conv2_b, d1_w, d1_b))
        o = jnp.tanh(d2_w @ h + d2_b)
        return 1.0 / (1.0 + jnp.exp(-o[0]))
    return jax.vmap(single)(uv_batch)


def renorm_rows(v, max_norm=1.0):
    """Emulate nn.Embedding(max_norm=1) renormalisation at lookup time."""
    n = jnp.sqrt(jnp.sum(v * v, axis=-1, keepdims=True))
    scale = jnp.where(n > max_norm, max_norm / (n + 1e-7), 1.0)
    return v * scale


# ----------------------------- main -------------------------------------------
if __name__ == "__main__":
    key = jax.random.PRNGKey(0)
    ks = jax.random.split(key, 12)

    # Small, forward-consistent sizes
    n_user_features, n_item_features = 10, 12
    dim = 32
    n_users, n_items = 6, 7
    nu_nb, ni_nb = 4, 4                        # neighbours per user / item row
    total_neighbours = nu_nb + ni_nb           # Conv1 in_channels = 8
    B = 2

    # "DataFrames" as deterministic integer index tables
    user_df = jax.random.randint(ks[0], (n_users, nu_nb), 0, n_user_features)
    item_df = jax.random.randint(ks[1], (n_items, ni_nb), 0, n_item_features)

    # Embedding tables (max_norm=1 handled at lookup via renorm_rows)
    user_emb = jax.random.normal(ks[2], (n_user_features, dim), jnp.float32)
    item_emb = jax.random.normal(ks[3], (n_item_features, dim), jnp.float32)

    # Conv / dense parameters (PyTorch weight layouts)
    conv1_w = 0.1 * jax.random.normal(ks[4], (8, total_neighbours, 3), jnp.float32)
    conv1_b = 0.1 * jax.random.normal(ks[5], (8,), jnp.float32)
    conv2_w = 0.1 * jax.random.normal(ks[6], (1, 8, 3), jnp.float32)
    conv2_b = 0.1 * jax.random.normal(ks[7], (1,), jnp.float32)
    d1_in, d1_out = dim // 4 - 2, dim // 8                   # 6 -> 4
    dense1_w = 0.1 * jax.random.normal(ks[8], (d1_out, d1_in), jnp.float32)
    dense1_b = 0.1 * jax.random.normal(ks[9], (d1_out,), jnp.float32)
    dense2_w = 0.1 * jax.random.normal(ks[10], (1, d1_out), jnp.float32)
    dense2_b = 0.1 * jax.random.normal(ks[11], (1,), jnp.float32)

    # Pre-compose conv1 -> pool1 -> conv2 -> pool2 -> dense1 into one (4, 256) matrix.
    w1_t, b1_col, w2_vec, b2_vec = compose_params(
        conv1_w, conv1_b, conv2_w, conv2_b, dense1_w, dense1_b,
        dense2_w, dense2_b, total_neighbours, dim)

    # Batch of (user, item) ids -> df lookup + embedding gather (max_norm=1) + concat (NCL).
    u = jnp.array([0, 3], dtype=jnp.int32)
    i = jnp.array([1, 5], dtype=jnp.int32)
    user_ids = user_df[u]                                    # (B, 4)
    item_ids = item_df[i]                                    # (B, 4)
    uf = renorm_rows(user_emb[user_ids])                     # (B, 4, dim)
    itf = renorm_rows(item_emb[item_ids])                    # (B, 4, dim)
    uv = jnp.concatenate([uf, itf], axis=1).astype(jnp.float32)  # (B, C=8, L=32)  NCL

    # Producer emits the kernel input directly as flattened (B, K) bf16 (no extra pass).
    x_bk = uv.reshape(B, total_neighbours * dim).astype(jnp.bfloat16)

    # force_pallas=True so the demo actually exercises the kernel (B=2 would otherwise
    # take the pure-XLA small-batch path).
    logit = cnn_forward(x_bk, w1_t, b1_col, w2_vec, b2_vec, force_pallas=True)
    jax.block_until_ready(logit)
    assert logit.shape == (B,)

    # Sanity-check against the non-composed f32 reference (bf16 rounding tolerance).
    ref = ref_forward(uv, conv1_w, conv1_b, conv2_w, conv2_b,
                      dense1_w, dense1_b, dense2_w, dense2_b)
    np.testing.assert_allclose(np.asarray(logit), np.asarray(ref), atol=2e-2, rtol=0)

    print("KERNEL_OK")
</pallas_src>

<mosaic_0001>
module attributes {stable_mosaic.version = 11 : i64} {
  func.func @cnn_kernel(%arg0: i32, %arg1: memref<128x256xbf16, #tpu.memory_space<vmem>>, %arg2: memref<4x256xbf16, #tpu.memory_space<vmem>>, %arg3: memref<4x1xf32, #tpu.memory_space<vmem>>, %arg4: memref<4xf32, #tpu.memory_space<smem>>, %arg5: memref<1xf32, #tpu.memory_space<smem>>, %arg6: memref<1x128xf32, #tpu.memory_space<vmem>>) attributes {dimension_semantics = [#tpu.dimension_semantics<parallel>], iteration_bounds = array<i64: 1>, scalar_prefetch = 0 : i64, scratch_operands = 0 : i64, tpu.core_type = #tpu.core_type<tc>, window_params = [{transform_indices = @transform_0, window_bounds = array<i64: 128, 256>}, {pipeline_mode = #tpu.pipeline_mode<synchronous>, transform_indices = @transform_1, window_bounds = array<i64: 4, 256>}, {pipeline_mode = #tpu.pipeline_mode<synchronous>, transform_indices = @transform_2, window_bounds = array<i64: 4, 1>}, {transform_indices = @transform_3, window_bounds = array<i64: 4>}, {transform_indices = @transform_4, window_bounds = array<i64: 1>}, {transform_indices = @transform_5, window_bounds = array<i64: 1, 128>}]} {
    %c0 = arith.constant 0 : index
    %c0_0 = arith.constant 0 : index
    %0 = vector.load %arg2[%c0, %c0_0] : memref<4x256xbf16, #tpu.memory_space<vmem>>, vector<4x256xbf16>
    %c0_1 = arith.constant 0 : index
    %c0_2 = arith.constant 0 : index
    %1 = vector.load %arg1[%c0_1, %c0_2] : memref<128x256xbf16, #tpu.memory_space<vmem>>, vector<128x256xbf16>
    %cst = arith.constant dense<0.000000e+00> : vector<4x128xf32>
    %2 = tpu.matmul %0, %1, %cst {dimension_numbers = #tpu.dot_dimension_numbers<[1], [1], [0], [0], [0, 0, 1, 0], [], []>} : vector<4x256xbf16>, vector<128x256xbf16>, vector<4x128xf32> -> vector<4x128xf32>
    %c0_3 = arith.constant 0 : index
    %c0_4 = arith.constant 0 : index
    %3 = vector.load %arg3[%c0_3, %c0_4] : memref<4x1xf32, #tpu.memory_space<vmem>>, vector<4x1xf32>
    %4 = vector.broadcast %3 : vector<4x1xf32> to vector<4x128xf32>
    %5 = arith.addf %2, %4 : vector<4x128xf32>
    %6 = math.tanh %5 : vector<4x128xf32>
    %c0_5 = arith.constant 0 : index
    %7 = memref.load %arg4[%c0_5] : memref<4xf32, #tpu.memory_space<smem>>
    %8 = vector.extract_strided_slice %6 {offsets = [0, 0], sizes = [1, 128], strides = [1, 1]} : vector<4x128xf32> to vector<1x128xf32>
    %9 = vector.broadcast %7 : f32 to vector<1x128xf32>
    %10 = arith.mulf %9, %8 : vector<1x128xf32>
    %c1 = arith.constant 1 : index
    %11 = memref.load %arg4[%c1] : memref<4xf32, #tpu.memory_space<smem>>
    %12 = vector.extract_strided_slice %6 {offsets = [1, 0], sizes = [1, 128], strides = [1, 1]} : vector<4x128xf32> to vector<1x128xf32>
    %13 = vector.broadcast %11 : f32 to vector<1x128xf32>
    %14 = arith.mulf %13, %12 : vector<1x128xf32>
    %15 = arith.addf %10, %14 : vector<1x128xf32>
    %c2 = arith.constant 2 : index
    %16 = memref.load %arg4[%c2] : memref<4xf32, #tpu.memory_space<smem>>
    %17 = vector.extract_strided_slice %6 {offsets = [2, 0], sizes = [1, 128], strides = [1, 1]} : vector<4x128xf32> to vector<1x128xf32>
    %18 = vector.broadcast %16 : f32 to vector<1x128xf32>
    %19 = arith.mulf %18, %17 : vector<1x128xf32>
    %20 = arith.addf %15, %19 : vector<1x128xf32>
    %c3 = arith.constant 3 : index
    %21 = memref.load %arg4[%c3] : memref<4xf32, #tpu.memory_space<smem>>
    %22 = vector.extract_strided_slice %6 {offsets = [3, 0], sizes = [1, 128], strides = [1, 1]} : vector<4x128xf32> to vector<1x128xf32>
    %23 = vector.broadcast %21 : f32 to vector<1x128xf32>
    %24 = arith.mulf %23, %22 : vector<1x128xf32>
    %25 = arith.addf %20, %24 : vector<1x128xf32>
    %c0_6 = arith.constant 0 : index
    %26 = memref.load %arg5[%c0_6] : memref<1xf32, #tpu.memory_space<smem>>
    %27 = vector.broadcast %26 : f32 to vector<1x128xf32>
    %28 = arith.addf %25, %27 : vector<1x128xf32>
    %29 = math.tanh %28 : vector<1x128xf32>
    %cst_7 = arith.constant 0.000000e+00 : f32
    %30 = vector.broadcast %cst_7 : f32 to vector<1x128xf32>
    %31 = arith.subf %30, %29 : vector<1x128xf32>
    %32 = math.exp %31 : vector<1x128xf32>
    %cst_8 = arith.constant 1.000000e+00 : f32
    %33 = vector.broadcast %cst_8 : f32 to vector<1x128xf32>
    %34 = arith.addf %33, %32 : vector<1x128xf32>
    %35 = tpu.reciprocal %34 : vector<1x128xf32> -> vector<1x128xf32>
    %c0_9 = arith.constant 0 : index
    %c0_10 = arith.constant 0 : index
    %36 = vector.load %arg6[%c0_9, %c0_10] : memref<1x128xf32, #tpu.memory_space<vmem>>, vector<1x128xf32>
    tpu.vector_store %arg6[%c0_9, %c0_10], %35 {strides = array<i32>} : memref<1x128xf32, #tpu.memory_space<vmem>>, vector<1x128xf32>,
    return
  }
  func.func @transform_0(%arg0: i32) -> (i32, i32) {
    %c0_i32 = arith.constant 0 : i32
    %c0_i32_0 = arith.constant 0 : i32
    return %arg0, %c0_i32 : i32, i32
  }
  func.func @transform_1(%arg0: i32) -> (i32, i32) {
    %c0_i32 = arith.constant 0 : i32
    %c0_i32_0 = arith.constant 0 : i32
    %c0_i32_1 = arith.constant 0 : i32
    return %c0_i32, %c0_i32_0 : i32, i32
  }
  func.func @transform_2(%arg0: i32) -> (i32, i32) {
    %c0_i32 = arith.constant 0 : i32
    %c0_i32_0 = arith.constant 0 : i32
    %c0_i32_1 = arith.constant 0 : i32
    return %c0_i32, %c0_i32_0 : i32, i32
  }
  func.func @transform_3(%arg0: i32) -> i32 {
    %c0_i32 = arith.constant 0 : i32
    %c0_i32_0 = arith.constant 0 : i32
    return %c0_i32 : i32
  }
  func.func @transform_4(%arg0: i32) -> i32 {
    %c0_i32 = arith.constant 0 : i32
    %c0_i32_0 = arith.constant 0 : i32
    return %c0_i32 : i32
  }
  func.func @transform_5(%arg0: i32) -> (i32, i32) {
    %c0_i32 = arith.constant 0 : i32
    %c0_i32_0 = arith.constant 0 : i32
    return %c0_i32, %arg0 : i32, i32
  }
}

</mosaic_0001>

<bundles_post_ra>
// kernel: tpu_custom_call.1
= control target key start
LH: loop header
LB: loop body
LE: loop exit
PB: predicated region body
PF: predicated region fallthrough
CT: control target
= control target key end

     0   :  { %11 = vsyncpa [#allocation5], 0  ;;  %s1192_s0 = inlined_call_operand.vmem [shape: bf16[2,256], index: 0, kind: input, shape index: {}]   ;;  %s1193_s1 = inlined_call_operand.vmem [shape: bf16[4,256], index: 1, kind: input, shape index: {}]   ;;  %s1194_s2 = inlined_call_operand.vmem [shape: f32[4,1], index: 2, kind: input, shape index: {}]   ;;  %s1195_s3 = inlined_call_operand.vmem [shape: f32[4], index: 3, kind: input, shape index: {}]   ;;  %s1196_s4 = inlined_call_operand.<no memory space> [shape: f32[1], index: 4, kind: input, shape index: {}]   ;;  %s1197_s5 = inlined_call_operand.hbm [shape: f32[1,128], index: 5, kind: output, shape index: {}]  }
   0x1   :  { %12 = vsyncpa [#allocation4], 0  ;;  %s25_s20 = sshll.u32 %s1195_s3, 4  ;;  %s26_s20 = int_to_ptr.vmem [resolvable:$true] %s25_s20 }
   0x2   :  { %s833_s21 = scalar_lea.vmem %s26_s20, 16  ;;  %p838_p1 = scmp.lt.s32.totalorder %s26_s20, %s26_s20 }
   0x3   :  { %p834_p0 = scmp.ne.s32.totalorder %s26_s20, %s833_s21  ;;  %p839_p2 = scmp.lt.s32.totalorder %s833_s21, %s833_s21 }
   0x5   :  { %p840_p3 = por %p839_p2, %p838_p1 }
   0x7   :  { %p841_p4 = pnand %p840_p3, %p834_p0 }
   0x9   :  { %844 = shalt.err (!%p841_p4)
}
   0xa   :  { %s871_s22 = smov [#allocation3]  }
   0xb   :  { %28 = dma.vmem_to_smem %s26_s20, 16, %s871_s22, [#allocation5]  }
   0xc   :  { %867 = dma.done.wait [#allocation5], 16  }
   0xd   :  { %868 = vsyncadd [#allocation5], 4294967280 }
   0xe   :  { %34 = sfence }
   0xf   :  { %v37_v0 = vld [vmem:[%s1192_s0] sm:$0x3]  ;;  %v38_v1 = vld [vmem:[%s1192_s0 + $0x2] sm:$0x3]  ;;  %v39_v2 = vld [vmem:[%s1192_s0 + $0x4] sm:$0x3]  ;;  %v189_v3 = vlaneseq }
  0x10   :  { %v40_v4 = vld [vmem:[%s1192_s0 + $0x6] sm:$0x3]  ;;  %v41_v5 = vld [vmem:[%s1192_s0 + $0x8] sm:$0x3]  ;;  %v42_v6 = vld [vmem:[%s1192_s0 + $0xa] sm:$0x3]  ;;  %v182_v14 = vcombine.low %v37_v0, %v38_v1 }
  0x11   :  { %v43_v7 = vld [vmem:[%s1192_s0 + $0xc] sm:$0x3]  ;;  %v44_v8 = vld [vmem:[%s1192_s0 + $0xe] sm:$0x3]  ;;  %v872_v9 = vmov 1966171168   ;;  %v183_v19 = vcombine.low %v39_v2, %v40_v4  ;;  %v184_v20 = vcombine.low %v41_v5, %v42_v6 }
  0x12   :  { %v187_v10 = vunpack.c.l.s4 %v872_v9  ;;  %v190_v11 = vshrl.u32 %v189_v3, 7  ;;  %v45_v12 = vld [vmem:[%s1192_s0 + $0x10] sm:$0x3]  ;;  %v46_v13 = vld [vmem:[%s1192_s0 + $0x12] sm:$0x3]  ;;  %v873_v18 = vmov 0   ;;  %v185_v21 = vcombine.low %v43_v7, %v44_v8 }
  0x13   :  { %v47_v15 = vld [vmem:[%s1192_s0 + $0x14] sm:$0x3]  ;;  %v48_v16 = vld [vmem:[%s1192_s0 + $0x16] sm:$0x3]  ;;  %v49_v17 = vld [vmem:[%s1192_s0 + $0x18] sm:$0x3]  ;;  %824 = vset.pattern.permute.xlu0 %v873_v18  ;;  %v248_v26 = vcombine.low %v45_v12, %v46_v13 }
  0x14   :  { %v188_v22 = vunpack.c.0.s8 %v187_v10  ;;  %v50_v23 = vld [vmem:[%s1192_s0 + $0x1a] sm:$0x3]  ;;  %v51_v24 = vld [vmem:[%s1192_s0 + $0x1c] sm:$0x3]  ;;  %v52_v25 = vld [vmem:[%s1192_s0 + $0x1e] sm:$0x3]  ;;  %v249_v27 = vcombine.low %v47_v15, %v48_v16 }
  0x15   :  { %v250_v28 = vcombine.low %v49_v17, %v50_v23  ;;  %v251_v29 = vcombine.low %v51_v24, %v52_v25  ;;  %v53_v30 = vld [vmem:[%s1192_s0 + $0x20] sm:$0x3]  ;;  %v54_v31 = vld [vmem:[%s1192_s0 + $0x22] sm:$0x3]  ;;  %v55_v33 = vld [vmem:[%s1192_s0 + $0x24] sm:$0x3] }
  0x16   :  { %v962_v32 = vsub.s32 %v188_v22, %v190_v11  ;;  %v314_v34 = vcombine.low %v53_v30, %v54_v31  ;;  %v56_v39 = vld [vmem:[%s1192_s0 + $0x26] sm:$0x3]  ;;  %v57_v40 = vld [vmem:[%s1192_s0 + $0x28] sm:$0x3]  ;;  %v58_v41 = vld [vmem:[%s1192_s0 + $0x2a] sm:$0x3] }
  0x17   :  { %v59_v52 = vld [vmem:[%s1192_s0 + $0x2c] sm:$0x3]  ;;  %v60_v53 = vld [vmem:[%s1192_s0 + $0x2e] sm:$0x3]  ;;  %v315_v54 = vcombine.low %v55_v33, %v56_v39  ;;  %v316_v55 = vcombine.low %v57_v40, %v58_v41  ;;  %v61_v60 = vld [vmem:[%s1192_s0 + $0x30] sm:$0x3] }
  0x18   :  { %v192_v35 = vrot.slane %v182_v14, %v962_v32  ;;  %v199_v36 = vrot.slane %v183_v19, %v962_v32  ;;  %v206_v37 = vrot.slane %v184_v20, %v962_v32  ;;  %v213_v38 = vrot.slane %v185_v21, %v962_v32  ;;  %v62_v61 = vld [vmem:[%s1192_s0 + $0x32] sm:$0x3]  ;;  %v63_v62 = vld [vmem:[%s1192_s0 + $0x34] sm:$0x3]  ;;  %v64_v3 = vld [vmem:[%s1192_s0 + $0x36] sm:$0x3] }
  0x19   :  { %v258_v42 = vrot.slane %v248_v26, %v962_v32  ;;  %v265_v43 = vrot.slane %v249_v27, %v962_v32  ;;  %v272_v44 = vrot.slane %v250_v28, %v962_v32  ;;  %v279_v45 = vrot.slane %v251_v29, %v962_v32  ;;  %v65_v4 = vld [vmem:[%s1192_s0 + $0x38] sm:$0x3]  ;;  %v66_v5 = vld [vmem:[%s1192_s0 + $0x3a] sm:$0x3]  ;;  %v67_v10 = vld [vmem:[%s1192_s0 + $0x3c] sm:$0x3] }
  0x1a   :  { %v215_v46 = vcombine.high %v192_v35, %v199_v36  ;;  %v217_v47 = vcombine.high %v206_v37, %v213_v38  ;;  %v214_v48 = vcombine.low %v192_v35, %v199_v36  ;;  %v216_v49 = vcombine.low %v206_v37, %v213_v38  ;;  %v68_v11 = vld [vmem:[%s1192_s0 + $0x3e] sm:$0x3]  ;;  %v69_v26 = vld [vmem:[%s1192_s0 + $0x40] sm:$0x3]  ;;  %v70_v27 = vld [vmem:[%s1192_s0 + $0x42] sm:$0x3] }
  0x1b   :  { %v281_v50 = vcombine.high %v258_v42, %v265_v43  ;;  %v283_v51 = vcombine.high %v272_v44, %v279_v45  ;;  %v280_v1 = vcombine.low %v258_v42, %v265_v43  ;;  %v282_v2 = vcombine.low %v272_v44, %v279_v45  ;;  %v71_v28 = vld [vmem:[%s1192_s0 + $0x44] sm:$0x3]  ;;  %v72_v33 = vld [vmem:[%s1192_s0 + $0x46] sm:$0x3]  ;;  %v74_v35 = vld [vmem:[%s1192_s0 + $0x4a] sm:$0x3] }
  0x1c   :  { %v231_v56 = vrot.slane %v215_v46, %v962_v32  ;;  %v245_v57 = vrot.slane %v217_v47, %v962_v32  ;;  %v224_v58 = vrot.slane %v214_v48, %v962_v32  ;;  %v238_v59 = vrot.slane %v216_v49, %v962_v32  ;;  %v75_v39 = vld [vmem:[%s1192_s0 + $0x4c] sm:$0x3]  ;;  %v76_v40 = vld [vmem:[%s1192_s0 + $0x4e] sm:$0x3]  ;;  %v101_v44 = vld [vmem:[%s1194_s2] sm:$0xf] }
  0x1d   :  { %v297_v63 = vrot.slane %v281_v50, %v962_v32  ;;  %v311_v0 = vrot.slane %v283_v51, %v962_v32  ;;  %v317_v8 = vcombine.low %v59_v52, %v60_v53  ;;  %v324_v9 = vrot.slane %v314_v34, %v962_v32  ;;  %v73_v34 = vld [vmem:[%s1192_s0 + $0x48] sm:$0x3]  ;;  %104 = vperm.xlu0 %824, %v101_v44   ;;  %v77_v52 = vld [vmem:[%s1192_s0 + $0x50] sm:$0x3]  ;;  %v78_v53 = vld [vmem:[%s1192_s0 + $0x52] sm:$0x3] }
  0x1e   :  { %v247_v6 = vcombine.low %v231_v56, %v245_v57  ;;  %v246_v7 = vcombine.low %v224_v58, %v238_v59  ;;  %v331_v13 = vrot.slane %v315_v54, %v962_v32  ;;  %v338_v14 = vrot.slane %v316_v55, %v962_v32  ;;  %v79_v56 = vld [vmem:[%s1192_s0 + $0x54] sm:$0x3]  ;;  %v80_v57 = vld [vmem:[%s1192_s0 + $0x56] sm:$0x3]  ;;  %v81_v58 = vld [vmem:[%s1192_s0 + $0x58] sm:$0x3] }
  0x1f   :  { %v313_v12 = vcombine.low %v297_v63, %v311_v0  ;;  %v345_v15 = vrot.slane %v317_v8, %v962_v32  ;;  %v380_v16 = vcombine.low %v61_v60, %v62_v61  ;;  %v381_v17 = vcombine.low %v63_v62, %v64_v3  ;;  %v82_v63 = vld [vmem:[%s1192_s0 + $0x5a] sm:$0x3]  ;;  %v83_v0 = vld [vmem:[%s1192_s0 + $0x5c] sm:$0x3]  ;;  %s818_s22 = sld [smem:[#allocation3 + $0x2]]  ;;  %s767_s23 = sld [smem:[#allocation3]] }
  0x20   :  { %726 = vmatprep.subr.bf16.mxu0 %v247_v6  ;;  %v382_v18 = vcombine.low %v65_v4, %v66_v5  ;;  %v290_v19 = vrot.slane %v280_v1, %v962_v32  ;;  %v304_v20 = vrot.slane %v282_v2, %v962_v32  ;;  %v347_v21 = vcombine.high %v324_v9, %v331_v13  ;;  %v84_v1 = vld [vmem:[%s1192_s0 + $0x5e] sm:$0x3]  ;;  %s819_s24 = sld [smem:[#allocation3 + $0x3]]  ;;  %s874_s3 = smov [#allocation6]  }
  0x21   :  { %727 = vmatpush1.bf16.xpose.msra.mxu0 %v246_v7  ;;  %v383_v22 = vcombine.low %v67_v10, %v68_v11  ;;  %v349_v23 = vcombine.high %v338_v14, %v345_v15  ;;  %v390_v24 = vrot.slane %v380_v16, %v962_v32  ;;  %v397_v25 = vrot.slane %v381_v17, %v962_v32  ;;  %s807_s27 = sshll.u32 %s874_s3, 4  ;;  %s808_s27 = int_to_ptr.vmem [resolvable:$true] %s807_s27 }
  0x22   :  { %728 = vmatprep.subr.bf16.mxu0 %v313_v12  ;;  %v363_v29 = vrot.slane %v347_v21, %v962_v32  ;;  %v404_v30 = vrot.slane %v382_v18, %v962_v32  ;;  %v346_v37 = vcombine.low %v324_v9, %v331_v13  ;;  %v348_v38 = vcombine.low %v338_v14, %v345_v15  ;;  %v85_v14 = vld [vmem:[%s1192_s0 + $0x60] sm:$0x3]  ;;  %v88_v21 = vld [vmem:[%s1192_s0 + $0x66] sm:$0x3]  ;;  %s845_s28 = scalar_lea.vmem %s808_s27, 16  ;;  %s849_s29 = scalar_lea.vmem %s808_s27, 32 }
  0x23   :  { %v411_v31 = vrot.slane %v383_v22, %v962_v32  ;;  %v377_v36 = vrot.slane %v349_v23, %v962_v32  ;;  %v312_v41 = vcombine.low %v290_v19, %v304_v20  ;;  %v413_v42 = vcombine.high %v390_v24, %v397_v25  ;;  %v86_v19 = vld [vmem:[%s1192_s0 + $0x62] sm:$0x3]  ;;  %v87_v20 = vld [vmem:[%s1192_s0 + $0x64] sm:$0x3]  ;;  %p846_p5 = scmp.ne.s32.totalorder %s808_s27, %s845_s28  ;;  %p850_p6 = scmp.lt.s32.totalorder %s808_s27, %s808_s27 }
  0x24   :  { %v446_v46 = vcombine.low %v69_v26, %v70_v27  ;;  %v447_v47 = vcombine.low %v71_v28, %v72_v33  ;;  %v448_v48 = vcombine.low %v73_v34, %v74_v35  ;;  %v449_v49 = vcombine.low %v75_v39, %v76_v40  ;;  %v90_v26 = vld [vmem:[%s1192_s0 + $0x6a] sm:$0x3]  ;;  %v91_v27 = vld [vmem:[%s1192_s0 + $0x6c] sm:$0x3]  ;;  %v92_v28 = vld [vmem:[%s1192_s0 + $0x6e] sm:$0x3]  ;;  %p851_p7 = scmp.lt.s32.totalorder %s849_s29, %s845_s28 }
  0x25   :  { %v415_v43 = vcombine.high %v404_v30, %v411_v31  ;;  %v379_v45 = vcombine.low %v363_v29, %v377_v36  ;;  %v356_v50 = vrot.slane %v346_v37, %v962_v32  ;;  %v370_v51 = vrot.slane %v348_v38, %v962_v32 }
  0x26   :  { %v429_v54 = vrot.slane %v413_v42, %v962_v32  ;;  %v456_v59 = vrot.slane %v446_v46, %v962_v32  ;;  %v463_v60 = vrot.slane %v447_v47, %v962_v32  ;;  %v470_v61 = vrot.slane %v448_v48, %v962_v32  ;;  %v94_v46 = vld [vmem:[%s1192_s0 + $0x72] sm:$0x3]  ;;  %p852_p8 = por %p851_p7, %p850_p6 }
  0x27   :  { %v443_v55 = vrot.slane %v415_v43, %v962_v32  ;;  %v477_v62 = vrot.slane %v449_v49, %v962_v32  ;;  %v378_v2 = vcombine.low %v356_v50, %v370_v51  ;;  %v412_v3 = vcombine.low %v390_v24, %v397_v25  ;;  %v89_v24 = vld [vmem:[%s1192_s0 + $0x68] sm:$0x3]  ;;  %v1117_v25 = vld.sshfl [vmem:[%s1193_s1] sm:$0x33 pattern:$0x76325410] }
  0x28   :  { %v414_v4 = vcombine.low %v404_v30, %v411_v31  ;;  %v512_v5 = vcombine.low %v77_v52, %v78_v53  ;;  %v513_v6 = vcombine.low %v79_v56, %v80_v57  ;;  %v514_v7 = vcombine.low %v81_v58, %v82_v63  ;;  %v95_v51 = vld [vmem:[%s1192_s0 + $0x74] sm:$0x3]  ;;  %v96_v52 = vld [vmem:[%s1192_s0 + $0x76] sm:$0x3]  ;;  %v97_v53 = vld [vmem:[%s1192_s0 + $0x78] sm:$0x3]  ;;  %p853_p9 = pnand %p852_p8, %p846_p5 }
  0x29   :  { %729 = vmatpush1.bf16.xpose.msra.mxu0 %v312_v41  ;;  %v515_v8 = vcombine.low %v83_v0, %v84_v1  ;;  %v445_v9 = vcombine.low %v429_v54, %v443_v55  ;;  %v479_v10 = vcombine.high %v456_v59, %v463_v60  ;;  %v481_v11 = vcombine.high %v470_v61, %v477_v62  ;;  %v98_v54 = vld [vmem:[%s1192_s0 + $0x7a] sm:$0x3]  ;;  %v99_v55 = vld [vmem:[%s1192_s0 + $0x7c] sm:$0x3]  ;;  %v100_v56 = vld [vmem:[%s1192_s0 + $0x7e] sm:$0x3] }
  0x2a   :  { %730 = vmatprep.subr.bf16.mxu0 %v379_v45  ;;  %v422_v12 = vrot.slane %v412_v3, %v962_v32  ;;  %v436_v13 = vrot.slane %v414_v4, %v962_v32  ;;  %v522_v15 = vrot.slane %v512_v5, %v962_v32  ;;  %v529_v16 = vrot.slane %v513_v6, %v962_v32  ;;  %v93_v45 = vld [vmem:[%s1192_s0 + $0x70] sm:$0x3]  ;;  %s817_s0 = sld [smem:[#allocation3 + $0x1]] }
  0x2b   :  { %v536_v17 = vrot.slane %v514_v7, %v962_v32  ;;  %v543_v18 = vrot.slane %v515_v8, %v962_v32  ;;  %v495_v22 = vrot.slane %v479_v10, %v962_v32  ;;  %v509_v23 = vrot.slane %v481_v11, %v962_v32 }
  0x2c   :  { %v444_v29 = vcombine.low %v422_v12, %v436_v13  ;;  %v478_v30 = vcombine.low %v456_v59, %v463_v60  ;;  %v480_v31 = vcombine.low %v470_v61, %v477_v62  ;;  %v545_v33 = vcombine.high %v522_v15, %v529_v16 }
  0x2d   :  { %v547_v34 = vcombine.high %v536_v17, %v543_v18  ;;  %v578_v35 = vcombine.low %v85_v14, %v86_v19  ;;  %v115_v36 = vcombine.high %v1117_v25, %v1117_v25  ;;  %v511_v37 = vcombine.low %v495_v22, %v509_v23 }
  0x2e   :  { %v579_v38 = vcombine.low %v87_v20, %v88_v21  ;;  %v580_v39 = vcombine.low %v89_v24, %v90_v26  ;;  %v581_v40 = vcombine.low %v91_v27, %v92_v28  ;;  %v488_v41 = vrot.slane %v478_v30, %v962_v32 }
  0x2f   :  { %758 = vmatprep.mubr.bf16.mxu0 %v115_v36  ;;  %v502_v42 = vrot.slane %v480_v31, %v962_v32  ;;  %v561_v43 = vrot.slane %v545_v33, %v962_v32  ;;  %v575_v44 = vrot.slane %v547_v34, %v962_v32  ;;  %v588_v47 = vrot.slane %v578_v35, %v962_v32 }
  0x30   :  { %v595_v48 = vrot.slane %v579_v38, %v962_v32  ;;  %v602_v49 = vrot.slane %v580_v39, %v962_v32  ;;  %v609_v50 = vrot.slane %v581_v40, %v962_v32  ;;  %v544_v57 = vcombine.low %v522_v15, %v529_v16 }
  0x31   :  { %731 = vmatpush1.bf16.xpose.msra.mxu0 %v378_v2  ;;  %v546_v58 = vcombine.low %v536_v17, %v543_v18  ;;  %v510_v59 = vcombine.low %v488_v41, %v502_v42  ;;  %v577_v60 = vcombine.low %v561_v43, %v575_v44  ;;  %v644_v61 = vcombine.low %v93_v45, %v94_v46 }
  0x32   :  { %732 = vmatprep.subr.bf16.mxu0 %v445_v9  ;;  %v645_v62 = vcombine.low %v95_v51, %v96_v52  ;;  %v611_v63 = vcombine.high %v588_v47, %v595_v48  ;;  %v613_v0 = vcombine.high %v602_v49, %v609_v50  ;;  %v646_v1 = vcombine.low %v97_v53, %v98_v54 }
  0x33   :  { %v647_v2 = vcombine.low %v99_v55, %v100_v56  ;;  %v554_v3 = vrot.slane %v544_v57, %v962_v32  ;;  %v568_v4 = vrot.slane %v546_v58, %v962_v32  ;;  %v654_v5 = vrot.slane %v644_v61, %v962_v32 }
  0x34   :  { %v661_v6 = vrot.slane %v645_v62, %v962_v32  ;;  %v627_v7 = vrot.slane %v611_v63, %v962_v32  ;;  %v641_v8 = vrot.slane %v613_v0, %v962_v32  ;;  %v668_v9 = vrot.slane %v646_v1, %v962_v32 }
  0x35   :  { %v675_v10 = vrot.slane %v647_v2, %v962_v32  ;;  %v576_v11 = vcombine.low %v554_v3, %v568_v4  ;;  %v610_v12 = vcombine.low %v588_v47, %v595_v48  ;;  %v612_v13 = vcombine.low %v602_v49, %v609_v50 }
  0x36   :  { %v643_v14 = vcombine.low %v627_v7, %v641_v8  ;;  %v677_v15 = vcombine.high %v654_v5, %v661_v6  ;;  %v676_v22 = vcombine.low %v654_v5, %v661_v6  ;;  %v771_v36 = vstv %s817_s0 }
  0x37   :  { %v679_v16 = vcombine.high %v668_v9, %v675_v10  ;;  %v620_v17 = vrot.slane %v610_v12, %v962_v32  ;;  %v634_v18 = vrot.slane %v612_v13, %v962_v32  ;;  %v678_v23 = vcombine.low %v668_v9, %v675_v10 }
  0x38   :  { %v693_v19 = vrot.slane %v677_v15, %v962_v32  ;;  %v686_v26 = vrot.slane %v676_v22, %v962_v32  ;;  %v785_v39 = vstv %s819_s24  ;;  %v792_v48 = vstv %s1196_s4 }
  0x39   :  { %733 = vmatpush1.bf16.xpose.msra.mxu0 %v444_v29  ;;  %v707_v20 = vrot.slane %v679_v16, %v962_v32  ;;  %v642_v21 = vcombine.low %v620_v17, %v634_v18  ;;  %v700_v27 = vrot.slane %v678_v23, %v962_v32  ;;  %v768_v32 = vstv %s767_s23 }
  0x3a   :  { %734 = vmatprep.subr.bf16.mxu0 %v511_v37  ;;  %v778_v37 = vstv %s818_s22 }
  0x3b   :  { %v709_v24 = vcombine.low %v693_v19, %v707_v20  ;;  %v708_v28 = vcombine.low %v686_v26, %v700_v27 }
  0x41   :  { %735 = vmatpush1.bf16.xpose.msra.mxu0 %v510_v59 }
  0x42   :  { %736 = vmatprep.subr.bf16.mxu0 %v577_v60 }
  0x49   :  { %737 = vmatpush1.bf16.xpose.msra.mxu0 %v576_v11 }
  0x4a   :  { %738 = vmatprep.subr.bf16.mxu0 %v643_v14 }
  0x51   :  { %739 = vmatpush1.bf16.xpose.msra.mxu0 %v642_v21 }
  0x52   :  { %740 = vmatprep.subr.bf16.mxu0 %v709_v24 }
  0x59   :  { %741 = vmatpush1.bf16.xpose.msra.mxu0 %v708_v28 }
  0x60   :  { %759 = vmatmul.mubr.bf16.vlgmr.msra.gmra.mrb[0].mxu0 %v1117_v25 }
  0x9c   :  { %v105_v29 = vpop.permute.xlu0 %104 }
 0x133   :  { %v760_v30 = vpop.f32.mrb[0].mxu0 }
 0x134   :  { %v761_v31 = vadd.f32 %v760_v30, %v105_v29  ;;  %v762_v33 = vpop.f32.mrb[1].mxu0 }
 0x135   :  { %v763_v34 = vpop.f32.mrb[2].mxu0 }
 0x136   :  { %825 = vtanh.f32 %v761_v31  ;;  %v764_v35 = vpop.f32.mrb[3].mxu0 }
 0x140   :  { %v826_v38 = vpop.eup %825 }
 0x141   :  { %v772_v40 = vmul.f32 %v826_v38, %v771_v36  ;;  %v779_v41 = vmul.f32 %v826_v38, %v778_v37  ;;  %v769_v42 = vmul.f32 %v826_v38, %v768_v32  ;;  %v786_v43 = vmul.f32 %v826_v38, %v785_v39 }
 0x143   :  { %v774_v25 = vrot.slane %v772_v40, 1  ;;  %v781_v45 = vrot.slane %v779_v41, 2  ;;  %v788_v47 = vrot.slane %v786_v43, 3 }
 0x145   :  { %v776_v44 = vadd.f32 %v774_v25, %v769_v42 }
 0x147   :  { %v783_v46 = vadd.f32 %v781_v45, %v776_v44 }
 0x149   :  { %v790_v49 = vadd.f32 %v788_v47, %v783_v46 }
 0x14b   :  { %v793_v50 = vadd.f32 %v792_v48, %v790_v49 }
 0x14d   :  { %827 = vtanh.f32 %v793_v50 }
 0x157   :  { %v828_v51 = vpop.eup %827 }
 0x158   :  { %v795_v52 = vsub.f32 0.0, %v828_v51 }
 0x15a   :  { %v796_v53 = vmul.f32 1.442695, %v795_v52 }
 0x15c   :  { %829 = vpow2.f32 %v796_v53 }
 0x166   :  { %v830_v54 = vpop.eup %829 }
 0x167   :  { %v798_v55 = vadd.f32 1.0, %v830_v54 }
 0x169   :  { %831 = vrcp.f32 %v798_v55 }
 0x173   :  { %v832_v56 = vpop.eup %831 }
 0x174   :  { %800 = vst [vmem:[#allocation6] sm:$0x1] %v832_v56 }
 0x175   :  { %856 = shalt.err (!%p853_p9)
}
 0x176   :  { %s857_s30 = scalar_lea.hbm %s1197_s5, 16 }
 0x177   :  { %p858_p10 = scmp.ne.s32.totalorder %s1197_s5, %s857_s30  ;;  %p861_p11 = scmp.lt.u32.totalorder %s857_s30, %s1197_s5 }
 0x179   :  { %p863_p12 = pnand %p861_p11, %p858_p10 }
 0x17b   :  { %866 = shalt.err (!%p863_p12)
}
 0x17c   :  { %810 = dma.vmem_to_hbm [thread:$0]  %s808_s27, 16, %s1197_s5, [#allocation4]  }
 0x17d   :  { %869 = dma.done.wait [#allocation4], 16  }
 0x17e   :  { %870 = vsyncadd [#allocation4], 4294967280 }
 0x17f   :  { %814 = vsyncpa [#allocation4], 1 }
 0x180   :  { %815 = vsyncpa [#allocation5], 1 }

</bundles_post_ra>
